<compile_context>
chip_gen: v5e
topology: v5e:2x2
jax: 0.10.0
libtpu: 0.0.40
codegen_flags: <defaults>
</compile_context>

<pallas_src>
import functools

import jax
import jax.numpy as jnp
from jax.experimental import pallas as pl
from jax.experimental.pallas import tpu as pltpu


def _conv_patch_kernel(x_ref, w_ref, b_ref, out_ref):
    # x_ref:  [TM, K]  one tile of patched-history rows (K = P*D, k = t*D + d)
    # w_ref:  [K, E]   VMEM-resident conv weight
    # b_ref:  [1, E]   VMEM-resident conv bias
    # out_ref:[TM, E]  embedding tile
    acc = jnp.dot(x_ref[...], w_ref[...], preferred_element_type=jnp.float32)
    out_ref[...] = (acc + b_ref[...]).astype(out_ref.dtype)


def _round_up(x, m):
    return ((x + m - 1) // m) * m


@functools.partial(jax.jit,
                   static_argnames=("patch_size", "block_rows", "use_bf16"))
def patch_embedding(long_term_history, long_feat, weight, bias, *,
                    patch_size, block_rows=1024, use_bf16=False):
    """JAX/Pallas equivalent of PatchEmbedding.forward.

    Args:
      long_term_history: [B, N, L, D] float32
      long_feat:         [B, N, L, 2] float32
      weight:            [E, D, P, 1] float32 (PyTorch Conv2d weight layout)
      bias:              [E] float32
      patch_size:        P (must divide L)
      block_rows:        row-tile size for the Pallas grid (multiple of 8)
      use_bf16:          optional bandwidth optimization (v5e/v6e): stream the
                         activations/weight in bf16, accumulate in f32.

    Returns:
      output:     [B, N, L//P, E] float32
      feat_patch: [B, N, L//P, 2] int32
    """
    B, N, L, D = long_term_history.shape
    P = int(patch_size)
    assert L % P == 0, "patch_size must divide the time-series length"
    Pn = L // P
    E = weight.shape[0]
    K = P * D
    M = B * N * Pn

    # ---- conv-as-matmul operands (row-major reshapes only, no big transpose) ----
    # row m = (b, n, p); column k = t*D + d  == natural memory order of the input.
    xp = long_term_history.reshape(M, K)
    # Permute the tiny weight instead: W2[k = t*D + d, e] = weight[e, d, t, 0].
    w2 = jnp.transpose(weight[..., 0], (2, 1, 0)).reshape(K, E)
    b2 = bias.reshape(1, E)

    if use_bf16:
        # Slight precision change vs the f32 PyTorch conv; MXU accumulates f32.
        xp = xp.astype(jnp.bfloat16)
        w2 = w2.astype(jnp.bfloat16)

    # ---- row tiling: TM multiple of 8, zero-pad the tail, pipelined 1-D grid ----
    tm = min(int(block_rows), _round_up(M, 8))
    m_pad = _round_up(M, tm)
    if m_pad != M:
        xp = jnp.pad(xp, ((0, m_pad - M), (0, 0)))
    grid = (m_pad // tm,)

    bytes_per = 2 if use_bf16 else 4
    out_emb = pl.pallas_call(
        _conv_patch_kernel,
        out_shape=jax.ShapeDtypeStruct((m_pad, E), jnp.float32),
        grid=grid,
        in_specs=[
            pl.BlockSpec((tm, K), lambda i: (i, 0)),   # streamed activations
            pl.BlockSpec((K, E), lambda i: (0, 0)),    # resident weight
            pl.BlockSpec((1, E), lambda i: (0, 0)),    # resident bias
        ],
        out_specs=pl.BlockSpec((tm, E), lambda i: (i, 0)),
        compiler_params=pltpu.CompilerParams(
            dimension_semantics=("parallel",)),        # megacore sharding on v7x
        cost_estimate=pl.CostEstimate(
            flops=2 * m_pad * K * E,
            transcendentals=0,
            bytes_accessed=(m_pad * K + K * E) * bytes_per
                           + (E + m_pad * E) * 4),
    )(xp, w2, b2)

    output = out_emb[:M].reshape(B, N, Pn, E)

    # ---- long_feat: AvgPool2d((P,1)) + round + int cast, in plain JAX ----
    # (kept out of the kernel on purpose: widths 2/4 are lane-starved on TPU and
    #  the work is negligible; XLA fuses this trivially.)
    fp = long_feat.reshape(B, N, Pn, P, 2)
    # TODO(synk): PyTorch .long() is int64; JAX default config keeps int32 here.
    feat_patch = jnp.round(jnp.mean(fp, axis=3)).astype(jnp.int32)

    return output, feat_patch


if __name__ == "__main__":
    # cfg-implied small shapes
    B, N, L = 2, 3, 16            # batch, num_nodes, len_time_series
    D = 4                         # cfg['in_channel']
    E = 32                        # cfg['embed_dim']
    P = 4                         # cfg['task']['patch_size']

    key = jax.random.PRNGKey(0)
    k_hist, k_feat, k_w, k_b = jax.random.split(key, 4)

    long_term_history = jax.random.normal(k_hist, (B, N, L, D), dtype=jnp.float32)
    long_feat = 3.0 * jax.random.uniform(k_feat, (B, N, L, 2), dtype=jnp.float32)

    # Deterministic Conv2d parameter init (PyTorch-like uniform bound).
    fan_in = D * P * 1
    bound = 1.0 / (fan_in ** 0.5)
    weight = jax.random.uniform(k_w, (E, D, P, 1), dtype=jnp.float32,
                                minval=-bound, maxval=bound)
    bias = jax.random.uniform(k_b, (E,), dtype=jnp.float32,
                              minval=-bound, maxval=bound)

    output, feat_patch = patch_embedding(long_term_history, long_feat,
                                         weight, bias, patch_size=P)
    jax.block_until_ready((output, feat_patch))

    assert output.shape == (B, N, L // P, E)
    assert feat_patch.shape == (B, N, L // P, 2)

    # Cheap numerical sanity check against a pure-JAX reference.
    ref = jnp.einsum("bnptd,edt->bnpe",
                     long_term_history.reshape(B, N, L // P, P, D),
                     weight[..., 0]) + bias
    assert jnp.allclose(output, ref, atol=3e-2, rtol=3e-2)

    print("KERNEL_OK")
</pallas_src>

<mosaic_0001>
module attributes {stable_mosaic.version = 11 : i64} {
  func.func @_conv_patch_kernel(%arg0: i32, %arg1: memref<24x16xf32, #tpu.memory_space<vmem>>, %arg2: memref<16x32xf32, #tpu.memory_space<vmem>>, %arg3: memref<1x32xf32, #tpu.memory_space<vmem>>, %arg4: memref<24x32xf32, #tpu.memory_space<vmem>>) attributes {dimension_semantics = [#tpu.dimension_semantics<parallel>], iteration_bounds = array<i64: 1>, scalar_prefetch = 0 : i64, scratch_operands = 0 : i64, tpu.core_type = #tpu.core_type<tc>, window_params = [{transform_indices = @transform_0, window_bounds = array<i64: 24, 16>}, {pipeline_mode = #tpu.pipeline_mode<synchronous>, transform_indices = @transform_1, window_bounds = array<i64: 16, 32>}, {pipeline_mode = #tpu.pipeline_mode<synchronous>, transform_indices = @transform_2, window_bounds = array<i64: 1, 32>}, {transform_indices = @transform_3, window_bounds = array<i64: 24, 32>}]} {
    %c0 = arith.constant 0 : index
    %c0_0 = arith.constant 0 : index
    %0 = vector.load %arg1[%c0, %c0_0] : memref<24x16xf32, #tpu.memory_space<vmem>>, vector<24x16xf32>
    %c0_1 = arith.constant 0 : index
    %c0_2 = arith.constant 0 : index
    %1 = vector.load %arg2[%c0_1, %c0_2] : memref<16x32xf32, #tpu.memory_space<vmem>>, vector<16x32xf32>
    %cst = arith.constant dense<0.000000e+00> : vector<24x32xf32>
    %2 = tpu.matmul %0, %1, %cst {dimension_numbers = #tpu.dot_dimension_numbers<[1], [0], [0], [1], [0, 0, 1, 1], [], []>} : vector<24x16xf32>, vector<16x32xf32>, vector<24x32xf32> -> vector<24x32xf32>
    %c0_3 = arith.constant 0 : index
    %c0_4 = arith.constant 0 : index
    %3 = vector.load %arg3[%c0_3, %c0_4] : memref<1x32xf32, #tpu.memory_space<vmem>>, vector<1x32xf32>
    %4 = vector.broadcast %3 : vector<1x32xf32> to vector<24x32xf32>
    %5 = arith.addf %2, %4 : vector<24x32xf32>
    %c0_5 = arith.constant 0 : index
    %c0_6 = arith.constant 0 : index
    %6 = vector.load %arg4[%c0_5, %c0_6] : memref<24x32xf32, #tpu.memory_space<vmem>>, vector<24x32xf32>
    tpu.vector_store %arg4[%c0_5, %c0_6], %5 {strides = array<i32>} : memref<24x32xf32, #tpu.memory_space<vmem>>, vector<24x32xf32>,
    return
  }
  func.func @transform_0(%arg0: i32) -> (i32, i32) {
    %c0_i32 = arith.constant 0 : i32
    %c0_i32_0 = arith.constant 0 : i32
    return %arg0, %c0_i32 : i32, i32
  }
  func.func @transform_1(%arg0: i32) -> (i32, i32) {
    %c0_i32 = arith.constant 0 : i32
    %c0_i32_0 = arith.constant 0 : i32
    %c0_i32_1 = arith.constant 0 : i32
    return %c0_i32, %c0_i32_0 : i32, i32
  }
  func.func @transform_2(%arg0: i32) -> (i32, i32) {
    %c0_i32 = arith.constant 0 : i32
    %c0_i32_0 = arith.constant 0 : i32
    %c0_i32_1 = arith.constant 0 : i32
    return %c0_i32, %c0_i32_0 : i32, i32
  }
  func.func @transform_3(%arg0: i32) -> (i32, i32) {
    %c0_i32 = arith.constant 0 : i32
    %c0_i32_0 = arith.constant 0 : i32
    return %arg0, %c0_i32 : i32, i32
  }
}

</mosaic_0001>

<bundles_post_ra>
// kernel: patch_embedding.1
= control target key start
LH: loop header
LB: loop body
LE: loop exit
PB: predicated region body
PF: predicated region fallthrough
CT: control target
= control target key end

     0   :  { %vm24_vm0 = vcmask 130048   ;;  %s163_s0 = inlined_call_operand.vmem [shape: f32[24,16], index: 0, kind: input, shape index: {}]   ;;  %s164_s1 = inlined_call_operand.vmem [shape: f32[16,32], index: 1, kind: input, shape index: {}]   ;;  %s165_s2 = inlined_call_operand.vmem [shape: f32[1,32], index: 2, kind: input, shape index: {}]   ;;  %s166_s3 = inlined_call_operand.hbm [shape: f32[24,32], index: 3, kind: output, shape index: {}]  }
   0x1   :  { %v19_v0 = vld [vmem:[%s164_s1 + $0x8] sm:$0xff]  ;;  %v18_v1 = vld [vmem:[%s164_s1] sm:$0xff]  ;;  %v17_v2 = vld [vmem:[%s163_s0 + $0x10] sm:$0xff] }
   0x2   :  { %86 = vmatpush.msra.mxu2 %v19_v0  ;;  %48 = vmatpush.msra.mxu0 %v19_v0  ;;  %v15_v3 = vld [vmem:[%s163_s0] sm:$0xff]  ;;  %v16_v4 = vld [vmem:[%s163_s0 + $0x8] sm:$0xff] }
   0x3   :  { %85 = vmatpush.msra.mxu1 %v19_v0 }
   0x4   :  { %8 = vsyncpa [#allocation3], 0  ;;  %88 = vmatpush.msra.mxu2 %v18_v1  ;;  %49 = vmatpush.msra.mxu0 %v18_v1  ;;  %v92_v5 = vld [vmem:[%s165_s2] ss:$0 sm:$0xff]  ;;  %vm60_vm1 = vcmask 261120   ;;  %s119_s23 = smov [#allocation2]  }
   0x5   :  { %84 = vmatmul.msk.f32.vlgmr.msra.gmra.mxu2 %vm24_vm0, %v17_v2  ;;  %87 = vmatpush.msra.mxu1 %v18_v1  ;;  %s68_s24 = sshll.u32 %s119_s23, 4  ;;  %s70_s26 = sshll.u32 %s166_s3, 4  ;;  %s69_s24 = int_to_ptr.vmem [resolvable:$true] %s68_s24  ;;  %s71_s26 = int_to_ptr.hbm [resolvable:$true] %s70_s26 }
   0x6   :  { %82 = vmatmul.msk.f32.vlgmr.msra.gmra.mxu0 %vm24_vm0, %v15_v3  ;;  %83 = vmatmul.msk.f32.vlgmr.msra.gmra.mxu1 %vm24_vm0, %v16_v4  ;;  %s120_s27 = smov 128   ;;  %s121_s2 = smov 8  }
  0x83   :  { %v51_v6 = vpop.f32.mrf.mxu0  ;;  %v54_v7 = vpop.f32.mrf.mxu1 }
  0x84   :  { %v52_v8 = vadd.f32 %v92_v5, %v51_v6  ;;  %v55_v9 = vadd.f32 %v92_v5, %v54_v7 }
  0x86   :  { %61 = vst.msk [vmem:[#allocation2] sm:$0xff] %vm60_vm1, %v52_v8 }
  0x87   :  { %62 = vst.msk [vmem:[#allocation2 + $0x8] sm:$0xff] %vm60_vm1, %v55_v9 }
  0x88   :  { %v57_v10 = vpop.f32.mrf.mxu2 }
  0x89   :  { %v58_v11 = vadd.f32 %v92_v5, %v57_v10 }
  0x8b   :  { %63 = vst.msk [vmem:[#allocation2 + $0x10] sm:$0xff] %vm60_vm1, %v58_v11 }
  0x8c   :  { %76 = dma.vmem_to_hbm [thread:$0]  %s69_s24, 384, %s71_s26, [#allocation3], %s120_s27, %s120_s27, %s121_s2  }
  0x8d   :  { %117 = dma.done.wait [#allocation3], 384  }
  0x8e   :  { %118 = vsyncadd [#allocation3], 4294966912 }
  0x8f   :  { %81 = vsyncpa [#allocation3], 1 }

</bundles_post_ra>
